<compile_context>
chip_gen: v5e
topology: v5e:2x2
jax: 0.10.0
libtpu: 0.0.40
codegen_flags: <defaults>
</compile_context>

<pallas_src>
import functools

import jax
import jax.numpy as jnp
from jax import lax
from jax.experimental import pallas as pl
from jax.experimental.pallas import tpu as pltpu


def _rnn_chunk_kernel(xproj_ref, h0_ref, wh_ref, out_ref, hid_ref,
                      *, seq_len, chunk, needs_mask):
    """One grid step == `chunk` consecutive RNN time steps.

    xproj_ref : (chunk, B_pad, N_pad)  x_t @ Wx + b, precomputed (streamed)
    h0_ref    : (B_pad, N_pad)         initial hidden, lane-dense (resident)
    wh_ref    : (N_pad, N_pad)         recurrent weights, rows >= H zeroed (resident)
    out_ref   : (chunk, B_pad, N_pad)  fused pre-activations for this chunk (streamed)
    hid_ref   : (B_pad, N_pad)         hidden-state carry (resident output)
    """
    t = pl.program_id(0)

    @pl.when(t == 0)
    def _():
        hid_ref[...] = h0_ref[...]

    wh = wh_ref[...]                     # hoisted once per chunk
    base = t * chunk

    def step(i, h):
        # Full-vreg work only: (B_pad,128) @ (128,128) + (B_pad,128), tanh on EUP.
        pre = xproj_ref[i] + jnp.dot(h, wh, preferred_element_type=jnp.float32)
        out_ref[i] = pre.astype(out_ref.dtype)
        h_new = jnp.tanh(pre)            # extra lanes are free; zero Wh rows kill them
        if needs_mask:                   # only traced when T % chunk != 0
            h_new = jnp.where(base + i < seq_len, h_new, h)
        return h_new

    hid_ref[...] = lax.fori_loop(0, chunk, step, hid_ref[...], unroll=True)


def rnn_sequence_forward(xs, h0, w_i2h, b_i2h, w_i2o, b_i2o, *, chunk=None):
    """Run the RNN cell over a whole sequence in one pallas_call.

    xs : (T, B, input_size)
    h0 : (B, hidden_size)
    w_i2h : (hidden_size, input_size + hidden_size)   (PyTorch nn.Linear layout)
    b_i2h : (hidden_size,)
    w_i2o : (output_size, input_size + hidden_size)
    b_i2o : (output_size,)

    Returns (outputs, hidden_final) with outputs: (T, B, output_size).
    """
    T, B, I = xs.shape
    H = w_i2h.shape[0]
    O = w_i2o.shape[0]
    f32 = jnp.float32

    B_pad = max(8, ((B + 7) // 8) * 8)            # sublane multiple
    N_pad = ((H + O + 127) // 128) * 128          # lane-dense width (also carry width)

    if chunk is None:
        chunk = min(T, 16)                        # amortize per-grid-step overhead
    n_chunks = pl.cdiv(T, chunk)
    T_pad = n_chunks * chunk
    needs_mask = (T_pad != T)                     # guard carry on ragged last chunk

    # ---- one-time parameter prep (hoisted out of the recurrence) ----
    # Fuse i2h / i2o column-wise: cols [0:H] -> hidden pre-act, [H:H+O] -> output.
    w_cat = jnp.concatenate([w_i2h.T, w_i2o.T], axis=1).astype(f32)     # (I+H, H+O)
    wx = jnp.zeros((I, N_pad), f32).at[:, :H + O].set(w_cat[:I])        # (I, N_pad)
    # Recurrent part padded to a full MXU tile. Rows >= H MUST stay zero: the
    # lane-dense carry is tanh(pre) over all N_pad lanes, and the zero rows
    # guarantee the non-hidden lanes never feed back into the recurrence.
    wh = jnp.zeros((N_pad, N_pad), f32).at[:H, :H + O].set(w_cat[I:])   # (N_pad, N_pad)
    b = jnp.zeros((N_pad,), f32).at[:H + O].set(
        jnp.concatenate([b_i2h, b_i2o]).astype(f32))

    # ---- hoisted input projection: ONE big GEMM over all time steps ----
    xs_p = jnp.zeros((T_pad, B_pad, I), f32).at[:T, :B].set(xs.astype(f32))
    xproj = (xs_p.reshape(T_pad * B_pad, I) @ wx + b).reshape(T_pad, B_pad, N_pad)

    # Lane-dense initial hidden. Padded batch rows / lanes stay zero; padded
    # batch rows of the carry later hold tanh of bias terms — harmless because
    # nothing reduces over the batch dimension and they are sliced off below.
    h0_p = jnp.zeros((B_pad, N_pad), f32).at[:B, :H].set(h0.astype(f32))

    kernel = functools.partial(_rnn_chunk_kernel, seq_len=T, chunk=chunk,
                               needs_mask=needs_mask)

    fused, hid = pl.pallas_call(
        kernel,
        out_shape=(
            jax.ShapeDtypeStruct((T_pad, B_pad, N_pad), f32),   # pre-activations
            jax.ShapeDtypeStruct((B_pad, N_pad), f32),          # final hidden (lane-dense)
        ),
        grid=(n_chunks,),
        in_specs=[
            pl.BlockSpec((chunk, B_pad, N_pad), lambda t: (t, 0, 0)),  # xproj streamed
            pl.BlockSpec((B_pad, N_pad), lambda t: (0, 0)),            # h0 resident
            pl.BlockSpec((N_pad, N_pad), lambda t: (0, 0)),            # Wh resident
        ],
        out_specs=(
            pl.BlockSpec((chunk, B_pad, N_pad), lambda t: (t, 0, 0)),  # streamed
            pl.BlockSpec((B_pad, N_pad), lambda t: (0, 0)),            # resident carry
        ),
        compiler_params=pltpu.CompilerParams(
            dimension_semantics=("arbitrary",)),   # time recurrence -> sequential
    )(xproj, h0_p, wh)

    outputs = fused[:T, :B, H:H + O]              # slice padding off once
    hidden = hid[:B, :H]
    return outputs, hidden


def rnn_forward(x, h, w_i2h, b_i2h, w_i2o, b_i2o):
    """Single-step API matching the PyTorch module's forward(input, hidden)."""
    outs, new_h = rnn_sequence_forward(x[None], h, w_i2h, b_i2h, w_i2o, b_i2o)
    return outs[0], new_h


# ------------------------- pure-JAX reference -------------------------------
def _reference_step(x, h, w_i2h, b_i2h, w_i2o, b_i2o):
    combined = jnp.concatenate([x, h], axis=1)
    out = combined @ w_i2o.T + b_i2o
    new_h = jnp.tanh(combined @ w_i2h.T + b_i2h)
    return out, new_h


def _reference_sequence(xs, h0, w_i2h, b_i2h, w_i2o, b_i2o):
    h = h0
    outs = []
    for t in range(xs.shape[0]):
        o, h = _reference_step(xs[t], h, w_i2h, b_i2h, w_i2o, b_i2o)
        outs.append(o)
    return jnp.stack(outs), h


if __name__ == "__main__":
    batch = 2
    input_size = 16
    hidden_size = 32
    output_size = 8
    seq_len = 8

    key = jax.random.PRNGKey(0)
    kx, k1, k2, k3, k4 = jax.random.split(key, 5)

    xs = jax.random.normal(kx, (seq_len, batch, input_size), dtype=jnp.float32)
    h0 = jnp.zeros((batch, hidden_size), dtype=jnp.float32)   # init_hidden()

    fan_in = input_size + hidden_size
    bound = 1.0 / jnp.sqrt(jnp.float32(fan_in))
    w_i2h = jax.random.uniform(k1, (hidden_size, fan_in), jnp.float32, -bound, bound)
    b_i2h = jax.random.uniform(k2, (hidden_size,), jnp.float32, -bound, bound)
    w_i2o = jax.random.uniform(k3, (output_size, fan_in), jnp.float32, -bound, bound)
    b_i2o = jax.random.uniform(k4, (output_size,), jnp.float32, -bound, bound)

    # Fused whole-sequence kernel.
    outs, h_final = rnn_sequence_forward(xs, h0, w_i2h, b_i2h, w_i2o, b_i2o)
    outs = jax.block_until_ready(outs)
    h_final = jax.block_until_ready(h_final)

    ref_outs, ref_h = _reference_sequence(xs, h0, w_i2h, b_i2h, w_i2o, b_i2o)
    assert outs.shape == (seq_len, batch, output_size)
    assert h_final.shape == (batch, hidden_size)
    assert jnp.allclose(outs, ref_outs, atol=1e-5, rtol=1e-5)
    assert jnp.allclose(h_final, ref_h, atol=1e-5, rtol=1e-5)

    # Ragged-chunk path (T not divisible by the chunk) exercises the carry mask.
    outs_r, h_r = rnn_sequence_forward(xs[:5], h0, w_i2h, b_i2h, w_i2o, b_i2o, chunk=4)
    outs_r = jax.block_until_ready(outs_r)
    ref_outs_r, ref_h_r = _reference_sequence(xs[:5], h0, w_i2h, b_i2h, w_i2o, b_i2o)
    assert jnp.allclose(outs_r, ref_outs_r, atol=1e-5, rtol=1e-5)
    assert jnp.allclose(h_r, ref_h_r, atol=1e-5, rtol=1e-5)

    # Single-step API (matches module.forward(input, hidden) exactly).
    out1, h1 = rnn_forward(xs[0], h0, w_i2h, b_i2h, w_i2o, b_i2o)
    out1 = jax.block_until_ready(out1)
    ref_o1, ref_h1 = _reference_step(xs[0], h0, w_i2h, b_i2h, w_i2o, b_i2o)
    assert jnp.allclose(out1, ref_o1, atol=1e-5, rtol=1e-5)
    assert jnp.allclose(h1, ref_h1, atol=1e-5, rtol=1e-5)

    print("KERNEL_OK")
</pallas_src>

<mosaic_0001>
module attributes {stable_mosaic.version = 11 : i64} {
  func.func @_rnn_chunk_kernel(%arg0: i32, %arg1: memref<8x8x128xf32, #tpu.memory_space<vmem>>, %arg2: memref<8x128xf32, #tpu.memory_space<vmem>>, %arg3: memref<128x128xf32, #tpu.memory_space<vmem>>, %arg4: memref<8x8x128xf32, #tpu.memory_space<vmem>>, %arg5: memref<8x128xf32, #tpu.memory_space<vmem>>) attributes {dimension_semantics = [#tpu.dimension_semantics<arbitrary>], iteration_bounds = array<i64: 1>, scalar_prefetch = 0 : i64, scratch_operands = 0 : i64, tpu.core_type = #tpu.core_type<tc>, window_params = [{transform_indices = @transform_0, window_bounds = array<i64: 8, 8, 128>}, {pipeline_mode = #tpu.pipeline_mode<synchronous>, transform_indices = @transform_1, window_bounds = array<i64: 8, 128>}, {pipeline_mode = #tpu.pipeline_mode<synchronous>, transform_indices = @transform_2, window_bounds = array<i64: 128, 128>}, {transform_indices = @transform_3, window_bounds = array<i64: 8, 8, 128>}, {pipeline_mode = #tpu.pipeline_mode<synchronous>, transform_indices = @transform_4, window_bounds = array<i64: 8, 128>}]} {
    %c0_i32 = arith.constant 0 : i32
    %0 = arith.cmpi eq, %arg0, %c0_i32 : i32
    %1 = arith.extui %0 : i1 to i32
    %c0_i32_0 = arith.constant 0 : i32
    %2 = arith.cmpi ne, %1, %c0_i32_0 : i32
    scf.if %2 {
      %c0_46 = arith.constant 0 : index
      %c0_47 = arith.constant 0 : index
      %86 = vector.load %arg2[%c0_46, %c0_47] : memref<8x128xf32, #tpu.memory_space<vmem>>, vector<8x128xf32>
      %c0_48 = arith.constant 0 : index
      %c0_49 = arith.constant 0 : index
      %87 = vector.load %arg5[%c0_48, %c0_49] : memref<8x128xf32, #tpu.memory_space<vmem>>, vector<8x128xf32>
      tpu.vector_store %arg5[%c0_48, %c0_49], %86 {strides = array<i32>} : memref<8x128xf32, #tpu.memory_space<vmem>>, vector<8x128xf32>,
    } else {
    }
    %c0 = arith.constant 0 : index
    %c0_1 = arith.constant 0 : index
    %3 = vector.load %arg3[%c0, %c0_1] : memref<128x128xf32, #tpu.memory_space<vmem>>, vector<128x128xf32>
    %c0_2 = arith.constant 0 : index
    %c0_3 = arith.constant 0 : index
    %4 = vector.load %arg5[%c0_2, %c0_3] : memref<8x128xf32, #tpu.memory_space<vmem>>, vector<8x128xf32>
    %c0_i32_4 = arith.constant 0 : i32
    %5 = arith.index_cast %c0_i32_4 : i32 to index
    %c0_5 = arith.constant 0 : index
    %c0_6 = arith.constant 0 : index
    %6 = vector.load %arg1[%5, %c0_5, %c0_6] : memref<8x8x128xf32, #tpu.memory_space<vmem>>, vector<1x8x128xf32>
    %7 = vector.shape_cast %6 : vector<1x8x128xf32> to vector<8x128xf32>
    %cst = arith.constant dense<0.000000e+00> : vector<8x128xf32>
    %8 = tpu.matmul %4, %3, %cst {dimension_numbers = #tpu.dot_dimension_numbers<[1], [0], [0], [1], [0, 0, 1, 1], [], []>} : vector<8x128xf32>, vector<128x128xf32>, vector<8x128xf32> -> vector<8x128xf32>
    %9 = arith.addf %7, %8 : vector<8x128xf32>
    %10 = arith.index_cast %c0_i32_4 : i32 to index
    %c0_7 = arith.constant 0 : index
    %c0_8 = arith.constant 0 : index
    %11 = vector.load %arg4[%10, %c0_7, %c0_8] : memref<8x8x128xf32, #tpu.memory_space<vmem>>, vector<1x8x128xf32>
    %12 = vector.shape_cast %11 : vector<1x8x128xf32> to vector<8x128xf32>
    %13 = vector.shape_cast %9 : vector<8x128xf32> to vector<1x8x128xf32>
    tpu.vector_store %arg4[%10, %c0_7, %c0_8], %13 {strides = array<i32>} : memref<8x8x128xf32, #tpu.memory_space<vmem>>, vector<1x8x128xf32>,
    %14 = math.tanh %9 : vector<8x128xf32>
    %c1_i32 = arith.constant 1 : i32
    %15 = arith.index_cast %c1_i32 : i32 to index
    %c0_9 = arith.constant 0 : index
    %c0_10 = arith.constant 0 : index
    %16 = vector.load %arg1[%15, %c0_9, %c0_10] : memref<8x8x128xf32, #tpu.memory_space<vmem>>, vector<1x8x128xf32>
    %17 = vector.shape_cast %16 : vector<1x8x128xf32> to vector<8x128xf32>
    %cst_11 = arith.constant dense<0.000000e+00> : vector<8x128xf32>
    %18 = tpu.matmul %14, %3, %cst_11 {dimension_numbers = #tpu.dot_dimension_numbers<[1], [0], [0], [1], [0, 0, 1, 1], [], []>} : vector<8x128xf32>, vector<128x128xf32>, vector<8x128xf32> -> vector<8x128xf32>
    %19 = arith.addf %17, %18 : vector<8x128xf32>
    %20 = arith.index_cast %c1_i32 : i32 to index
    %c0_12 = arith.constant 0 : index
    %c0_13 = arith.constant 0 : index
    %21 = vector.load %arg4[%20, %c0_12, %c0_13] : memref<8x8x128xf32, #tpu.memory_space<vmem>>, vector<1x8x128xf32>
    %22 = vector.shape_cast %21 : vector<1x8x128xf32> to vector<8x128xf32>
    %23 = vector.shape_cast %19 : vector<8x128xf32> to vector<1x8x128xf32>
    tpu.vector_store %arg4[%20, %c0_12, %c0_13], %23 {strides = array<i32>} : memref<8x8x128xf32, #tpu.memory_space<vmem>>, vector<1x8x128xf32>,
    %24 = math.tanh %19 : vector<8x128xf32>
    %c2_i32 = arith.constant 2 : i32
    %25 = arith.index_cast %c2_i32 : i32 to index
    %c0_14 = arith.constant 0 : index
    %c0_15 = arith.constant 0 : index
    %26 = vector.load %arg1[%25, %c0_14, %c0_15] : memref<8x8x128xf32, #tpu.memory_space<vmem>>, vector<1x8x128xf32>
    %27 = vector.shape_cast %26 : vector<1x8x128xf32> to vector<8x128xf32>
    %cst_16 = arith.constant dense<0.000000e+00> : vector<8x128xf32>
    %28 = tpu.matmul %24, %3, %cst_16 {dimension_numbers = #tpu.dot_dimension_numbers<[1], [0], [0], [1], [0, 0, 1, 1], [], []>} : vector<8x128xf32>, vector<128x128xf32>, vector<8x128xf32> -> vector<8x128xf32>
    %29 = arith.addf %27, %28 : vector<8x128xf32>
    %30 = arith.index_cast %c2_i32 : i32 to index
    %c0_17 = arith.constant 0 : index
    %c0_18 = arith.constant 0 : index
    %31 = vector.load %arg4[%30, %c0_17, %c0_18] : memref<8x8x128xf32, #tpu.memory_space<vmem>>, vector<1x8x128xf32>
    %32 = vector.shape_cast %31 : vector<1x8x128xf32> to vector<8x128xf32>
    %33 = vector.shape_cast %29 : vector<8x128xf32> to vector<1x8x128xf32>
    tpu.vector_store %arg4[%30, %c0_17, %c0_18], %33 {strides = array<i32>} : memref<8x8x128xf32, #tpu.memory_space<vmem>>, vector<1x8x128xf32>,
    %34 = math.tanh %29 : vector<8x128xf32>
    %c3_i32 = arith.constant 3 : i32
    %35 = arith.index_cast %c3_i32 : i32 to index
    %c0_19 = arith.constant 0 : index
    %c0_20 = arith.constant 0 : index
    %36 = vector.load %arg1[%35, %c0_19, %c0_20] : memref<8x8x128xf32, #tpu.memory_space<vmem>>, vector<1x8x128xf32>
    %37 = vector.shape_cast %36 : vector<1x8x128xf32> to vector<8x128xf32>
    %cst_21 = arith.constant dense<0.000000e+00> : vector<8x128xf32>
    %38 = tpu.matmul %34, %3, %cst_21 {dimension_numbers = #tpu.dot_dimension_numbers<[1], [0], [0], [1], [0, 0, 1, 1], [], []>} : vector<8x128xf32>, vector<128x128xf32>, vector<8x128xf32> -> vector<8x128xf32>
    %39 = arith.addf %37, %38 : vector<8x128xf32>
    %40 = arith.index_cast %c3_i32 : i32 to index
    %c0_22 = arith.constant 0 : index
    %c0_23 = arith.constant 0 : index
    %41 = vector.load %arg4[%40, %c0_22, %c0_23] : memref<8x8x128xf32, #tpu.memory_space<vmem>>, vector<1x8x128xf32>
    %42 = vector.shape_cast %41 : vector<1x8x128xf32> to vector<8x128xf32>
    %43 = vector.shape_cast %39 : vector<8x128xf32> to vector<1x8x128xf32>
    tpu.vector_store %arg4[%40, %c0_22, %c0_23], %43 {strides = array<i32>} : memref<8x8x128xf32, #tpu.memory_space<vmem>>, vector<1x8x128xf32>,
    %44 = math.tanh %39 : vector<8x128xf32>
    %c4_i32 = arith.constant 4 : i32
    %45 = arith.index_cast %c4_i32 : i32 to index
    %c0_24 = arith.constant 0 : index
    %c0_25 = arith.constant 0 : index
    %46 = vector.load %arg1[%45, %c0_24, %c0_25] : memref<8x8x128xf32, #tpu.memory_space<vmem>>, vector<1x8x128xf32>
    %47 = vector.shape_cast %46 : vector<1x8x128xf32> to vector<8x128xf32>
    %cst_26 = arith.constant dense<0.000000e+00> : vector<8x128xf32>
    %48 = tpu.matmul %44, %3, %cst_26 {dimension_numbers = #tpu.dot_dimension_numbers<[1], [0], [0], [1], [0, 0, 1, 1], [], []>} : vector<8x128xf32>, vector<128x128xf32>, vector<8x128xf32> -> vector<8x128xf32>
    %49 = arith.addf %47, %48 : vector<8x128xf32>
    %50 = arith.index_cast %c4_i32 : i32 to index
    %c0_27 = arith.constant 0 : index
    %c0_28 = arith.constant 0 : index
    %51 = vector.load %arg4[%50, %c0_27, %c0_28] : memref<8x8x128xf32, #tpu.memory_space<vmem>>, vector<1x8x128xf32>
    %52 = vector.shape_cast %51 : vector<1x8x128xf32> to vector<8x128xf32>
    %53 = vector.shape_cast %49 : vector<8x128xf32> to vector<1x8x128xf32>
    tpu.vector_store %arg4[%50, %c0_27, %c0_28], %53 {strides = array<i32>} : memref<8x8x128xf32, #tpu.memory_space<vmem>>, vector<1x8x128xf32>,
    %54 = math.tanh %49 : vector<8x128xf32>
    %c5_i32 = arith.constant 5 : i32
    %55 = arith.index_cast %c5_i32 : i32 to index
    %c0_29 = arith.constant 0 : index
    %c0_30 = arith.constant 0 : index
    %56 = vector.load %arg1[%55, %c0_29, %c0_30] : memref<8x8x128xf32, #tpu.memory_space<vmem>>, vector<1x8x128xf32>
    %57 = vector.shape_cast %56 : vector<1x8x128xf32> to vector<8x128xf32>
    %cst_31 = arith.constant dense<0.000000e+00> : vector<8x128xf32>
    %58 = tpu.matmul %54, %3, %cst_31 {dimension_numbers = #tpu.dot_dimension_numbers<[1], [0], [0], [1], [0, 0, 1, 1], [], []>} : vector<8x128xf32>, vector<128x128xf32>, vector<8x128xf32> -> vector<8x128xf32>
    %59 = arith.addf %57, %58 : vector<8x128xf32>
    %60 = arith.index_cast %c5_i32 : i32 to index
    %c0_32 = arith.constant 0 : index
    %c0_33 = arith.constant 0 : index
    %61 = vector.load %arg4[%60, %c0_32, %c0_33] : memref<8x8x128xf32, #tpu.memory_space<vmem>>, vector<1x8x128xf32>
    %62 = vector.shape_cast %61 : vector<1x8x128xf32> to vector<8x128xf32>
    %63 = vector.shape_cast %59 : vector<8x128xf32> to vector<1x8x128xf32>
    tpu.vector_store %arg4[%60, %c0_32, %c0_33], %63 {strides = array<i32>} : memref<8x8x128xf32, #tpu.memory_space<vmem>>, vector<1x8x128xf32>,
    %64 = math.tanh %59 : vector<8x128xf32>
    %c6_i32 = arith.constant 6 : i32
    %65 = arith.index_cast %c6_i32 : i32 to index
    %c0_34 = arith.constant 0 : index
    %c0_35 = arith.constant 0 : index
    %66 = vector.load %arg1[%65, %c0_34, %c0_35] : memref<8x8x128xf32, #tpu.memory_space<vmem>>, vector<1x8x128xf32>
    %67 = vector.shape_cast %66 : vector<1x8x128xf32> to vector<8x128xf32>
    %cst_36 = arith.constant dense<0.000000e+00> : vector<8x128xf32>
    %68 = tpu.matmul %64, %3, %cst_36 {dimension_numbers = #tpu.dot_dimension_numbers<[1], [0], [0], [1], [0, 0, 1, 1], [], []>} : vector<8x128xf32>, vector<128x128xf32>, vector<8x128xf32> -> vector<8x128xf32>
    %69 = arith.addf %67, %68 : vector<8x128xf32>
    %70 = arith.index_cast %c6_i32 : i32 to index
    %c0_37 = arith.constant 0 : index
    %c0_38 = arith.constant 0 : index
    %71 = vector.load %arg4[%70, %c0_37, %c0_38] : memref<8x8x128xf32, #tpu.memory_space<vmem>>, vector<1x8x128xf32>
    %72 = vector.shape_cast %71 : vector<1x8x128xf32> to vector<8x128xf32>
    %73 = vector.shape_cast %69 : vector<8x128xf32> to vector<1x8x128xf32>
    tpu.vector_store %arg4[%70, %c0_37, %c0_38], %73 {strides = array<i32>} : memref<8x8x128xf32, #tpu.memory_space<vmem>>, vector<1x8x128xf32>,
    %74 = math.tanh %69 : vector<8x128xf32>
    %c7_i32 = arith.constant 7 : i32
    %75 = arith.index_cast %c7_i32 : i32 to index
    %c0_39 = arith.constant 0 : index
    %c0_40 = arith.constant 0 : index
    %76 = vector.load %arg1[%75, %c0_39, %c0_40] : memref<8x8x128xf32, #tpu.memory_space<vmem>>, vector<1x8x128xf32>
    %77 = vector.shape_cast %76 : vector<1x8x128xf32> to vector<8x128xf32>
    %cst_41 = arith.constant dense<0.000000e+00> : vector<8x128xf32>
    %78 = tpu.matmul %74, %3, %cst_41 {dimension_numbers = #tpu.dot_dimension_numbers<[1], [0], [0], [1], [0, 0, 1, 1], [], []>} : vector<8x128xf32>, vector<128x128xf32>, vector<8x128xf32> -> vector<8x128xf32>
    %79 = arith.addf %77, %78 : vector<8x128xf32>
    %80 = arith.index_cast %c7_i32 : i32 to index
    %c0_42 = arith.constant 0 : index
    %c0_43 = arith.constant 0 : index
    %81 = vector.load %arg4[%80, %c0_42, %c0_43] : memref<8x8x128xf32, #tpu.memory_space<vmem>>, vector<1x8x128xf32>
    %82 = vector.shape_cast %81 : vector<1x8x128xf32> to vector<8x128xf32>
    %83 = vector.shape_cast %79 : vector<8x128xf32> to vector<1x8x128xf32>
    tpu.vector_store %arg4[%80, %c0_42, %c0_43], %83 {strides = array<i32>} : memref<8x8x128xf32, #tpu.memory_space<vmem>>, vector<1x8x128xf32>,
    %84 = math.tanh %79 : vector<8x128xf32>
    %c8_i32 = arith.constant 8 : i32
    %c0_44 = arith.constant 0 : index
    %c0_45 = arith.constant 0 : index
    %85 = vector.load %arg5[%c0_44, %c0_45] : memref<8x128xf32, #tpu.memory_space<vmem>>, vector<8x128xf32>
    tpu.vector_store %arg5[%c0_44, %c0_45], %84 {strides = array<i32>} : memref<8x128xf32, #tpu.memory_space<vmem>>, vector<8x128xf32>,
    return
  }
  func.func @transform_0(%arg0: i32) -> (i32, i32, i32) {
    %c0_i32 = arith.constant 0 : i32
    %c0_i32_0 = arith.constant 0 : i32
    %c0_i32_1 = arith.constant 0 : i32
    return %arg0, %c0_i32, %c0_i32_0 : i32, i32, i32
  }
  func.func @transform_1(%arg0: i32) -> (i32, i32) {
    %c0_i32 = arith.constant 0 : i32
    %c0_i32_0 = arith.constant 0 : i32
    %c0_i32_1 = arith.constant 0 : i32
    return %c0_i32, %c0_i32_0 : i32, i32
  }
  func.func @transform_2(%arg0: i32) -> (i32, i32) {
    %c0_i32 = arith.constant 0 : i32
    %c0_i32_0 = arith.constant 0 : i32
    %c0_i32_1 = arith.constant 0 : i32
    return %c0_i32, %c0_i32_0 : i32, i32
  }
  func.func @transform_3(%arg0: i32) -> (i32, i32, i32) {
    %c0_i32 = arith.constant 0 : i32
    %c0_i32_0 = arith.constant 0 : i32
    %c0_i32_1 = arith.constant 0 : i32
    return %arg0, %c0_i32, %c0_i32_0 : i32, i32, i32
  }
  func.func @transform_4(%arg0: i32) -> (i32, i32) {
    %c0_i32 = arith.constant 0 : i32
    %c0_i32_0 = arith.constant 0 : i32
    %c0_i32_1 = arith.constant 0 : i32
    return %c0_i32, %c0_i32_0 : i32, i32
  }
}

</mosaic_0001>

<bundles_post_ra>
// kernel: tpu_custom_call.1
= control target key start
LH: loop header
LB: loop body
LE: loop exit
PB: predicated region body
PF: predicated region fallthrough
CT: control target
= control target key end

     0   :  { %10 = vsyncpa [#allocation3], 0  ;;  %s696_s0 = inlined_call_operand.hbm [shape: f32[8,8,128], index: 0, kind: input, shape index: {}]   ;;  %s697_s1 = inlined_call_operand.hbm [shape: f32[8,128], index: 1, kind: input, shape index: {}]   ;;  %s698_s2 = inlined_call_operand.hbm [shape: f32[128,128], index: 2, kind: input, shape index: {}]   ;;  %s699_s3 = inlined_call_operand.hbm [shape: f32[8,8,128], index: 3, kind: output, shape index: {0}]   ;;  %s700_s4 = inlined_call_operand.hbm [shape: f32[8,128], index: 4, kind: output, shape index: {1}]  }
   0x1   :  { %11 = vsyncpa [#allocation6], 0 }
   0x2   :  { %12 = vsyncpa [#allocation4], 0  ;;  %s32_s17 = sshll.u32 %s697_s1, 4  ;;  %s33_s17 = int_to_ptr.hbm [resolvable:$true] %s32_s17 }
   0x3   :  { %13 = vsyncpa [#allocation10], 0  ;;  %s480_s18 = smov [#allocation5]   ;;  %s18_s22 = sshll.u32 %s696_s0, 4  ;;  %s19_s22 = int_to_ptr.hbm [resolvable:$true] %s18_s22 }
   0x4   :  { %s34_s19 = sshll.u32 %s480_s18, 4  ;;  %s481_s23 = smov [#allocation2]   ;;  %s35_s19 = int_to_ptr.vmem [resolvable:$true] %s34_s19 }
   0x5   :  { %37 = dma.hbm_to_vmem [thread:$0]  %s33_s17, 128, %s35_s19, [#allocation6]  }
   0x6   :  { %s20_s24 = sshll.u32 %s481_s23, 4  ;;  %s482_s25 = smov 128   ;;  %s21_s24 = int_to_ptr.vmem [resolvable:$true] %s20_s24 }
   0x7   :  { %s483_s26 = smov 8   ;;  %s42_s28 = sshll.u32 %s698_s2, 4  ;;  %s43_s28 = int_to_ptr.hbm [resolvable:$true] %s42_s28 }
   0x8   :  { %26 = dma.hbm_to_vmem [thread:$0]  %s19_s22, 1024, %s21_s24, [#allocation3], %s482_s25, %s482_s25, %s483_s26  }
   0x9   :  { %s484_s29 = smov [#allocation7]  }
   0xa   :  { %s44_s30 = sshll.u32 %s484_s29, 4  ;;  %s45_s30 = int_to_ptr.vmem [resolvable:$true] %s44_s30 }
   0xb   :  { %50 = dma.hbm_to_vmem [thread:$0]  %s43_s28, 2048, %s45_s30, [#allocation6], %s482_s25, %s482_s25, %s483_s26  }
   0xc   :  { %472 = dma.done.wait [#allocation3], 1024  }
   0xd   :  { %473 = vsyncadd [#allocation3], 4294966272 }
   0xe   :  { %474 = dma.done.wait [#allocation6], 2176  }
   0xf   :  { %475 = vsyncadd [#allocation6], 4294965120  ;;  %v527_v0 = vld [vmem:[#allocation7 + $0x78] sm:$0xff]  ;;  %v529_v1 = vld [vmem:[#allocation7 + $0x70] sm:$0xff]  ;;  %s485_s0 = smov [#allocation8]   ;;  %s299_s7 = sshll.u32 %s699_s3, 4  ;;  %s300_s7 = int_to_ptr.hbm [resolvable:$true] %s299_s7 }
  0x10   :  { %87 = vmatpush.msra.mxu0 %v527_v0  ;;  %112 = vmatpush.msra.mxu1 %v527_v0  ;;  %v533_v2 = vld [vmem:[#allocation7 + $0x68] sm:$0xff]  ;;  %v539_v3 = vld [vmem:[#allocation7 + $0x60] sm:$0xff]  ;;  %v545_v4 = vld [vmem:[#allocation7 + $0x58] sm:$0xff]  ;;  %s297_s2 = sshll.u32 %s485_s0, 4  ;;  %s486_s8 = smov [#allocation9]   ;;  %s298_s2 = int_to_ptr.vmem [resolvable:$true] %s297_s2 }
  0x11   :  { %138 = vmatpush.msra.mxu2 %v527_v0  ;;  %164 = vmatpush.msra.mxu3 %v527_v0  ;;  %v551_v5 = vld [vmem:[#allocation7 + $0x50] sm:$0xff]  ;;  %v557_v6 = vld [vmem:[#allocation7 + $0x48] sm:$0xff]  ;;  %v563_v7 = vld [vmem:[#allocation7 + $0x40] sm:$0xff]  ;;  %s311_s9 = sshll.u32 %s486_s8, 4  ;;  %s313_s12 = sshll.u32 %s700_s4, 4  ;;  %s312_s9 = int_to_ptr.vmem [resolvable:$true] %s311_s9  ;;  %s314_s12 = int_to_ptr.hbm [resolvable:$true] %s313_s12 }
  0x12   :  { %88 = vmatpush.msra.mxu0 %v529_v1  ;;  %113 = vmatpush.msra.mxu1 %v529_v1  ;;  %v569_v8 = vld [vmem:[#allocation7 + $0x38] sm:$0xff]  ;;  %v575_v9 = vld [vmem:[#allocation7 + $0x30] sm:$0xff]  ;;  %v581_v10 = vld [vmem:[#allocation7 + $0x28] sm:$0xff] }
  0x13   :  { %139 = vmatpush.msra.mxu2 %v529_v1  ;;  %165 = vmatpush.msra.mxu3 %v529_v1  ;;  %v587_v11 = vld [vmem:[#allocation7 + $0x20] sm:$0xff]  ;;  %v593_v12 = vld [vmem:[#allocation7 + $0x18] sm:$0xff]  ;;  %v599_v13 = vld [vmem:[#allocation7 + $0x10] sm:$0xff] }
  0x14   :  { %89 = vmatpush.msra.mxu0 %v533_v2  ;;  %114 = vmatpush.msra.mxu1 %v533_v2  ;;  %v605_v14 = vld [vmem:[#allocation7 + $0x8] sm:$0xff]  ;;  %v611_v15 = vld [vmem:[#allocation7] sm:$0xff]  ;;  %v67_v16 = vld [vmem:[#allocation5] sm:$0xff] }
  0x15   :  { %140 = vmatpush.msra.mxu2 %v533_v2  ;;  %166 = vmatpush.msra.mxu3 %v533_v2  ;;  %v86_v17 = vld [vmem:[#allocation2] sm:$0xff]  ;;  %v111_v21 = vld [vmem:[#allocation2 + $0x8] sm:$0xff]  ;;  %v137_v25 = vld [vmem:[#allocation2 + $0x10] sm:$0xff] }
  0x16   :  { %90 = vmatpush.msra.mxu0 %v539_v3  ;;  %115 = vmatpush.msra.mxu1 %v539_v3  ;;  %v163_v29 = vld [vmem:[#allocation2 + $0x18] sm:$0xff]  ;;  %v189_v33 = vld [vmem:[#allocation2 + $0x20] sm:$0xff]  ;;  %v215_v37 = vld [vmem:[#allocation2 + $0x28] sm:$0xff] }
  0x17   :  { %141 = vmatpush.msra.mxu2 %v539_v3  ;;  %167 = vmatpush.msra.mxu3 %v539_v3  ;;  %v241_v41 = vld [vmem:[#allocation2 + $0x30] sm:$0xff]  ;;  %v267_v45 = vld [vmem:[#allocation2 + $0x38] sm:$0xff] }
  0x18   :  { %91 = vmatpush.msra.mxu0 %v545_v4  ;;  %116 = vmatpush.msra.mxu1 %v545_v4 }
  0x19   :  { %142 = vmatpush.msra.mxu2 %v545_v4  ;;  %168 = vmatpush.msra.mxu3 %v545_v4 }
  0x1a   :  { %92 = vmatpush.msra.mxu0 %v551_v5  ;;  %117 = vmatpush.msra.mxu1 %v551_v5 }
  0x1b   :  { %143 = vmatpush.msra.mxu2 %v551_v5  ;;  %169 = vmatpush.msra.mxu3 %v551_v5 }
  0x1c   :  { %93 = vmatpush.msra.mxu0 %v557_v6  ;;  %118 = vmatpush.msra.mxu1 %v557_v6 }
  0x1d   :  { %144 = vmatpush.msra.mxu2 %v557_v6  ;;  %170 = vmatpush.msra.mxu3 %v557_v6 }
  0x1e   :  { %94 = vmatpush.msra.mxu0 %v563_v7  ;;  %119 = vmatpush.msra.mxu1 %v563_v7 }
  0x1f   :  { %145 = vmatpush.msra.mxu2 %v563_v7  ;;  %171 = vmatpush.msra.mxu3 %v563_v7 }
  0x20   :  { %95 = vmatpush.msra.mxu0 %v569_v8  ;;  %120 = vmatpush.msra.mxu1 %v569_v8 }
  0x21   :  { %146 = vmatpush.msra.mxu2 %v569_v8  ;;  %172 = vmatpush.msra.mxu3 %v569_v8 }
  0x22   :  { %96 = vmatpush.msra.mxu0 %v575_v9  ;;  %121 = vmatpush.msra.mxu1 %v575_v9 }
  0x23   :  { %147 = vmatpush.msra.mxu2 %v575_v9  ;;  %173 = vmatpush.msra.mxu3 %v575_v9 }
  0x24   :  { %97 = vmatpush.msra.mxu0 %v581_v10  ;;  %122 = vmatpush.msra.mxu1 %v581_v10 }
  0x25   :  { %148 = vmatpush.msra.mxu2 %v581_v10  ;;  %174 = vmatpush.msra.mxu3 %v581_v10 }
  0x26   :  { %98 = vmatpush.msra.mxu0 %v587_v11  ;;  %123 = vmatpush.msra.mxu1 %v587_v11 }
  0x27   :  { %149 = vmatpush.msra.mxu2 %v587_v11  ;;  %175 = vmatpush.msra.mxu3 %v587_v11 }
  0x28   :  { %99 = vmatpush.msra.mxu0 %v593_v12  ;;  %124 = vmatpush.msra.mxu1 %v593_v12 }
  0x29   :  { %150 = vmatpush.msra.mxu2 %v593_v12  ;;  %176 = vmatpush.msra.mxu3 %v593_v12 }
  0x2a   :  { %100 = vmatpush.msra.mxu0 %v599_v13  ;;  %125 = vmatpush.msra.mxu1 %v599_v13 }
  0x2b   :  { %151 = vmatpush.msra.mxu2 %v599_v13  ;;  %177 = vmatpush.msra.mxu3 %v599_v13 }
  0x2c   :  { %101 = vmatpush.msra.mxu0 %v605_v14  ;;  %126 = vmatpush.msra.mxu1 %v605_v14 }
  0x2d   :  { %152 = vmatpush.msra.mxu2 %v605_v14  ;;  %178 = vmatpush.msra.mxu3 %v605_v14 }
  0x2e   :  { %102 = vmatpush.msra.mxu0 %v611_v15  ;;  %127 = vmatpush.msra.mxu1 %v611_v15 }
  0x2f   :  { %103 = vmatmul.f32.vlgmr.msra.gmra.mxu0 %v67_v16  ;;  %153 = vmatpush.msra.mxu2 %v611_v15 }
  0x30   :  { %179 = vmatpush.msra.mxu3 %v611_v15  ;;  %190 = vmatpush.msrb.mxu0 %v527_v0 }
  0x31   :  { %216 = vmatpush.msrb.mxu1 %v527_v0  ;;  %242 = vmatpush.msrb.mxu2 %v527_v0 }
  0x32   :  { %191 = vmatpush.msrb.mxu0 %v529_v1  ;;  %268 = vmatpush.msrb.mxu3 %v527_v0 }
  0x33   :  { %217 = vmatpush.msrb.mxu1 %v529_v1  ;;  %243 = vmatpush.msrb.mxu2 %v529_v1 }
  0x34   :  { %192 = vmatpush.msrb.mxu0 %v533_v2  ;;  %269 = vmatpush.msrb.mxu3 %v529_v1 }
  0x35   :  { %218 = vmatpush.msrb.mxu1 %v533_v2  ;;  %244 = vmatpush.msrb.mxu2 %v533_v2 }
  0x36   :  { %193 = vmatpush.msrb.mxu0 %v539_v3  ;;  %270 = vmatpush.msrb.mxu3 %v533_v2 }
  0x37   :  { %219 = vmatpush.msrb.mxu1 %v539_v3  ;;  %245 = vmatpush.msrb.mxu2 %v539_v3 }
  0x38   :  { %194 = vmatpush.msrb.mxu0 %v545_v4  ;;  %271 = vmatpush.msrb.mxu3 %v539_v3 }
  0x39   :  { %220 = vmatpush.msrb.mxu1 %v545_v4  ;;  %246 = vmatpush.msrb.mxu2 %v545_v4 }
  0x3a   :  { %195 = vmatpush.msrb.mxu0 %v551_v5  ;;  %272 = vmatpush.msrb.mxu3 %v545_v4 }
  0x3b   :  { %221 = vmatpush.msrb.mxu1 %v551_v5  ;;  %247 = vmatpush.msrb.mxu2 %v551_v5 }
  0x3c   :  { %196 = vmatpush.msrb.mxu0 %v557_v6  ;;  %273 = vmatpush.msrb.mxu3 %v551_v5 }
  0x3d   :  { %222 = vmatpush.msrb.mxu1 %v557_v6  ;;  %248 = vmatpush.msrb.mxu2 %v557_v6 }
  0x3e   :  { %197 = vmatpush.msrb.mxu0 %v563_v7  ;;  %274 = vmatpush.msrb.mxu3 %v557_v6 }
  0x3f   :  { %223 = vmatpush.msrb.mxu1 %v563_v7  ;;  %249 = vmatpush.msrb.mxu2 %v563_v7 }
  0x40   :  { %198 = vmatpush.msrb.mxu0 %v569_v8  ;;  %275 = vmatpush.msrb.mxu3 %v563_v7 }
  0x41   :  { %224 = vmatpush.msrb.mxu1 %v569_v8  ;;  %250 = vmatpush.msrb.mxu2 %v569_v8 }
  0x42   :  { %199 = vmatpush.msrb.mxu0 %v575_v9  ;;  %276 = vmatpush.msrb.mxu3 %v569_v8 }
  0x43   :  { %225 = vmatpush.msrb.mxu1 %v575_v9  ;;  %251 = vmatpush.msrb.mxu2 %v575_v9 }
  0x44   :  { %200 = vmatpush.msrb.mxu0 %v581_v10  ;;  %277 = vmatpush.msrb.mxu3 %v575_v9 }
  0x45   :  { %226 = vmatpush.msrb.mxu1 %v581_v10  ;;  %252 = vmatpush.msrb.mxu2 %v581_v10 }
  0x46   :  { %201 = vmatpush.msrb.mxu0 %v587_v11  ;;  %278 = vmatpush.msrb.mxu3 %v581_v10 }
  0x47   :  { %227 = vmatpush.msrb.mxu1 %v587_v11  ;;  %253 = vmatpush.msrb.mxu2 %v587_v11 }
  0x48   :  { %202 = vmatpush.msrb.mxu0 %v593_v12  ;;  %279 = vmatpush.msrb.mxu3 %v587_v11 }
  0x49   :  { %228 = vmatpush.msrb.mxu1 %v593_v12  ;;  %254 = vmatpush.msrb.mxu2 %v593_v12 }
  0x4a   :  { %203 = vmatpush.msrb.mxu0 %v599_v13  ;;  %280 = vmatpush.msrb.mxu3 %v593_v12 }
  0x4b   :  { %229 = vmatpush.msrb.mxu1 %v599_v13  ;;  %255 = vmatpush.msrb.mxu2 %v599_v13 }
  0x4c   :  { %204 = vmatpush.msrb.mxu0 %v605_v14  ;;  %281 = vmatpush.msrb.mxu3 %v599_v13 }
  0x4d   :  { %230 = vmatpush.msrb.mxu1 %v605_v14  ;;  %256 = vmatpush.msrb.mxu2 %v605_v14 }
  0x4e   :  { %205 = vmatpush.msrb.mxu0 %v611_v15  ;;  %282 = vmatpush.msrb.mxu3 %v605_v14 }
  0x4f   :  { %231 = vmatpush.msrb.mxu1 %v611_v15  ;;  %257 = vmatpush.msrb.mxu2 %v611_v15 }
  0x50   :  { %283 = vmatpush.msrb.mxu3 %v611_v15 }
  0xac   :  { %v104_v18 = vpop.f32.mrf.mxu0 }
  0xad   :  { %v107_v19 = vadd.f32 %v104_v18, %v86_v17 }
  0xaf   :  { %108 = vst [vmem:[#allocation8] sm:$0xff] %v107_v19  ;;  %336 = vtanh.f32 %v107_v19 }
  0xb5   :  { %v337_v20 = vpop.eup %336 }
  0xb6   :  { %128 = vmatmul.f32.vlgmr.msra.gmra.mxu1 %v337_v20 }
 0x133   :  { %v129_v22 = vpop.f32.mrf.mxu1 }
 0x134   :  { %v132_v23 = vadd.f32 %v129_v22, %v111_v21 }
 0x136   :  { %134 = vst [vmem:[#allocation8 + $0x8] sm:$0xff] %v132_v23  ;;  %338 = vtanh.f32 %v132_v23 }
 0x13c   :  { %v339_v24 = vpop.eup %338 }
 0x13d   :  { %154 = vmatmul.f32.vlgmr.msra.gmra.mxu2 %v339_v24 }
 0x1c0   :  { %v155_v26 = vpop.f32.mrf.mxu2 }
 0x1c1   :  { %v158_v27 = vadd.f32 %v155_v26, %v137_v25 }
 0x1c3   :  { %160 = vst [vmem:[#allocation8 + $0x10] sm:$0xff] %v158_v27  ;;  %340 = vtanh.f32 %v158_v27 }
 0x1c9   :  { %v341_v28 = vpop.eup %340 }
 0x1ca   :  { %180 = vmatmul.f32.vlgmr.msra.gmra.mxu3 %v341_v28 }
 0x24d   :  { %v181_v30 = vpop.f32.mrf.mxu3 }
 0x24e   :  { %v184_v31 = vadd.f32 %v181_v30, %v163_v29 }
 0x250   :  { %186 = vst [vmem:[#allocation8 + $0x18] sm:$0xff] %v184_v31  ;;  %342 = vtanh.f32 %v184_v31 }
 0x256   :  { %v343_v32 = vpop.eup %342 }
 0x257   :  { %206 = vmatmul.f32.vlgmr.msrb.gmra.mxu0 %v343_v32 }
 0x2d4   :  { %v207_v34 = vpop.f32.mrf.mxu0 }
 0x2d5   :  { %v210_v35 = vadd.f32 %v207_v34, %v189_v33 }
 0x2d7   :  { %212 = vst [vmem:[#allocation8 + $0x20] sm:$0xff] %v210_v35  ;;  %344 = vtanh.f32 %v210_v35 }
 0x2dd   :  { %v345_v36 = vpop.eup %344 }
 0x2de   :  { %232 = vmatmul.f32.vlgmr.msrb.gmra.mxu1 %v345_v36 }
 0x35b   :  { %v233_v38 = vpop.f32.mrf.mxu1 }
 0x35c   :  { %v236_v39 = vadd.f32 %v233_v38, %v215_v37 }
 0x35e   :  { %238 = vst [vmem:[#allocation8 + $0x28] sm:$0xff] %v236_v39  ;;  %346 = vtanh.f32 %v236_v39 }
 0x364   :  { %v347_v40 = vpop.eup %346 }
 0x365   :  { %258 = vmatmul.f32.vlgmr.msrb.gmra.mxu2 %v347_v40 }
 0x3e8   :  { %v259_v42 = vpop.f32.mrf.mxu2 }
 0x3e9   :  { %v262_v43 = vadd.f32 %v259_v42, %v241_v41 }
 0x3eb   :  { %264 = vst [vmem:[#allocation8 + $0x30] sm:$0xff] %v262_v43  ;;  %348 = vtanh.f32 %v262_v43 }
 0x3f1   :  { %v349_v44 = vpop.eup %348 }
 0x3f2   :  { %284 = vmatmul.f32.vlgmr.msrb.gmra.mxu3 %v349_v44 }
 0x475   :  { %v285_v46 = vpop.f32.mrf.mxu3 }
 0x476   :  { %v288_v47 = vadd.f32 %v285_v46, %v267_v45 }
 0x478   :  { %290 = vst [vmem:[#allocation8 + $0x38] sm:$0xff] %v288_v47  ;;  %350 = vtanh.f32 %v288_v47 }
 0x479   :  { %305 = dma.vmem_to_hbm [thread:$0]  %s298_s2, 1024, %s300_s7, [#allocation4], %s482_s25, %s482_s25, %s483_s26  }
 0x47e   :  { %v351_v48 = vpop.eup %350 }
 0x47f   :  { %292 = vst [vmem:[#allocation9] sm:$0xff] %v351_v48 }
 0x480   :  { %316 = dma.vmem_to_hbm [thread:$0]  %s312_s9, 128, %s314_s12, [#allocation10]  }
 0x481   :  { %476 = dma.done.wait [#allocation4], 1024  }
 0x482   :  { %477 = vsyncadd [#allocation4], 4294966272 }
 0x483   :  { %478 = dma.done.wait [#allocation10], 128  }
 0x484   :  { %479 = vsyncadd [#allocation10], 4294967168 }
 0x485   :  { %325 = vsyncpa [#allocation3], 1 }
 0x486   :  { %326 = vsyncpa [#allocation6], 1 }
 0x487   :  { %327 = vsyncpa [#allocation4], 1 }
 0x488   :  { %328 = vsyncpa [#allocation10], 1 }

</bundles_post_ra>
